<compile_context>
chip_gen: v7x
topology: tpu7x:2x2x1
jax: 0.10.0
libtpu: 0.0.40
codegen_flags: <defaults>
</compile_context>

<pallas_src>
import functools

import jax
import jax.numpy as jnp
from jax.experimental import pallas as pl
from jax.experimental.pallas import tpu as pltpu

_LANES = 128


def _vmem_capacity_bytes():
    """Best-effort per-TensorCore VMEM capacity; conservative fallback (v7x size)."""
    try:
        cap = int(pltpu.get_tpu_info().vmem_capacity_bytes)
        if cap >= 32 * 1024 * 1024:
            return cap
    except Exception:
        pass
    return 64 * 1024 * 1024


def _dice_partial_kernel(p_ref, g_ref, inter_ref, psum_ref, gsum_ref, *,
                         n_tiles, block_tiles, blocks_per_core, last_block,
                         need_mask):
    c = pl.program_id(0)   # core axis (size 1 unless the v7x split is enabled)
    i = pl.program_id(1)   # reduction steps within this core's chunk

    @pl.when(i == 0)
    def _():
        inter_ref[...] = jnp.zeros_like(inter_ref)
        psum_ref[...] = jnp.zeros_like(psum_ref)
        gsum_ref[...] = jnp.zeros_like(gsum_ref)

    # Hot path: cast + one EUP tanh + a few VALU muls/adds + 3 XLU sublane reduces.
    x = p_ref[...].astype(jnp.float32)
    p = 0.5 * jnp.tanh(0.5 * x) + 0.5          # exact sigmoid, single EUP push
    g = g_ref[...].astype(jnp.float32)

    def accumulate(pp, gg):
        # Per-step partial reduce over the tile (sublane) axis into tiny (B,128)
        # resident output blocks: the adds live on the XLU, not the vst slot.
        inter_ref[0] += jnp.sum(pp * gg, axis=1)
        psum_ref[0] += jnp.sum(pp * pp, axis=1)
        gsum_ref[0] += jnp.sum(gg * gg, axis=1)

    if need_mask:
        b = c * blocks_per_core + i

        @pl.when(b != last_block)
        def _():
            accumulate(p, g)                    # fast path: no masking cost

        @pl.when(b == last_block)
        def _():
            # Only the single ragged boundary block pays for the mask.  Garbage
            # (even NaN) in the out-of-bounds region is discarded by the select.
            t_idx = jax.lax.broadcasted_iota(jnp.int32, p.shape, 1)
            valid = b * block_tiles + t_idx < n_tiles
            accumulate(jnp.where(valid, p, 0.0), jnp.where(valid, g, 0.0))
    else:
        accumulate(p, g)


def kernel_dice_loss(pred_kernels, kernels_gt, epsilon=1e-6, *,
                     max_block_elems=None, num_cores=1):
    """Pallas TPU implementation of KernelDiceLoss.forward."""
    B = pred_kernels.shape[0]
    pred2d = pred_kernels.reshape(B, -1)
    gt2d = kernels_gt.reshape(B, -1)
    N = pred2d.shape[1]

    n_main = (N // _LANES) * _LANES
    tail_inter = tail_psum = tail_gsum = jnp.zeros((B,), jnp.float32)
    if n_main != N:
        # <128 trailing features per row: tiny, handled in plain XLA instead of
        # padding both full inputs.
        p_t = jax.nn.sigmoid(pred2d[:, n_main:].astype(jnp.float32))
        g_t = gt2d[:, n_main:].astype(jnp.float32)
        tail_inter = jnp.sum(p_t * g_t, axis=1)
        tail_psum = jnp.sum(p_t * p_t, axis=1)
        tail_gsum = jnp.sum(g_t * g_t, axis=1)

    if n_main == 0:
        inter, p_sum, g_sum = tail_inter, tail_psum, tail_gsum
    else:
        if n_main != N:
            pred2d = pred2d[:, :n_main]
            gt2d = gt2d[:, :n_main]
        T = n_main // _LANES
        pred3d = pred2d.reshape(B, T, _LANES)   # free reshape (contiguous)
        gt3d = gt2d.reshape(B, T, _LANES)

        # --- generation-aware VMEM-budgeted block sizing (per TensorCore) -----
        vmem_cap = _vmem_capacity_bytes()
        budget = vmem_cap // 2                              # double-buffered inputs
        vmem_limit = min(int(vmem_cap * 0.75), 100 * 1024 * 1024)
        in_bytes = pred3d.dtype.itemsize + gt3d.dtype.itemsize
        s_max = budget // (2 * in_bytes * _LANES * B)       # 2x = double buffering
        if max_block_elems is not None:                     # test hook
            s_max = min(s_max, int(max_block_elems) // (B * _LANES))
        s_max = max(8, (int(s_max) // 8) * 8)

        if s_max >= T:
            S, NB = T, 1
        else:
            S, NB = s_max, pl.cdiv(T, s_max)

        # Optional 2-TensorCore split (v7x).  Requires an even block count so no
        # core ever receives a fully-empty (wasted-DMA) block.
        NC = 2 if (num_cores >= 2 and NB >= 2) else 1
        if NC == 2 and NB % 2 == 1:
            NC = 1
            for cand in range(S, 7, -8):
                nb = pl.cdiv(T, cand)
                if nb % 2 == 0:
                    S, NB, NC = cand, nb, 2
                    break
        G = NB // NC
        need_mask = (NB * S) != T
        last_block = NB - 1

        kern = functools.partial(
            _dice_partial_kernel, n_tiles=T, block_tiles=S,
            blocks_per_core=G, last_block=last_block, need_mask=need_mask)

        in_map = lambda c, i: (0, c * G + i, 0)
        out_map = lambda c, i: (c, 0, 0)
        partial_shape = jax.ShapeDtypeStruct((NC, B, _LANES), jnp.float32)
        sem0 = pltpu.CORE_PARALLEL if NC == 2 else pltpu.ARBITRARY

        inter_p, psum_p, gsum_p = pl.pallas_call(
            kern,
            out_shape=(partial_shape, partial_shape, partial_shape),
            grid_spec=pltpu.PrefetchScalarGridSpec(
                num_scalar_prefetch=0,
                grid=(NC, G),
                in_specs=[
                    pl.BlockSpec((B, S, _LANES), in_map),
                    pl.BlockSpec((B, S, _LANES), in_map),
                ],
                out_specs=[
                    pl.BlockSpec((1, B, _LANES), out_map),
                    pl.BlockSpec((1, B, _LANES), out_map),
                    pl.BlockSpec((1, B, _LANES), out_map),
                ],
            ),
            compiler_params=pltpu.CompilerParams(
                dimension_semantics=(sem0, pltpu.ARBITRARY),
                vmem_limit_bytes=vmem_limit,
            ),
        )(pred3d, gt3d)

        # Tiny epilogue on (NC, B, 128) partials: combine cores + lanes + tail.
        inter = jnp.sum(inter_p, axis=(0, 2)) + tail_inter
        p_sum = jnp.sum(psum_p, axis=(0, 2)) + tail_psum
        g_sum = jnp.sum(gsum_p, axis=(0, 2)) + tail_gsum

    p_sum = p_sum + epsilon
    g_sum = g_sum + epsilon
    dice = (2.0 * inter + epsilon) / (p_sum + g_sum)
    return jnp.sum(1.0 - dice)


def _reference_dice_loss(pred_kernels, kernels_gt, epsilon=1e-6):
    B = pred_kernels.shape[0]
    p = jax.nn.sigmoid(pred_kernels.astype(jnp.float32)).reshape(B, -1)
    g = kernels_gt.astype(jnp.float32).reshape(B, -1)
    inter = jnp.sum(p * g, axis=1)
    p_sum = jnp.sum(p * p, axis=1) + epsilon
    g_sum = jnp.sum(g * g, axis=1) + epsilon
    dice = (2.0 * inter + epsilon) / (p_sum + g_sum)
    return jnp.sum(1.0 - dice)


if __name__ == "__main__":
    key = jax.random.PRNGKey(0)

    def make(shape, k):
        k1, k2 = jax.random.split(k)
        pred = jax.random.normal(k1, shape, dtype=jnp.float32)
        gt = (jax.random.uniform(k2, shape, dtype=jnp.float32) > 0.5).astype(jnp.float32)
        return pred, gt

    keys = jax.random.split(key, 6)

    # Primary small case (NCHW, matches the PyTorch module).
    pred, gt = make((2, 4, 16, 16), keys[0])
    loss = jax.block_until_ready(kernel_dice_loss(pred, gt))
    ref = _reference_dice_loss(pred, gt)
    assert jnp.allclose(loss, ref, rtol=1e-4, atol=1e-4), (loss, ref)

    # Extra tiny checks: multi-step accumulation, ragged (masked) boundary block,
    # the XLA tail path, default large-block sizing, and the N<128 pure-XLA path.
    for shape, k, blk in (
        ((2, 4, 32, 32), keys[1], 2048),    # multi-step, exact block division
        ((2, 3, 20, 20), keys[2], 2048),    # XLA tail + ragged (masked) last block
        ((2, 10, 16, 16), keys[3], 2048),   # odd block count, masked last block
        ((2, 8, 64, 64), keys[4], None),    # default VMEM-budget block sizing
        ((2, 1, 5, 5), keys[5], None),      # N < 128 -> pure XLA path
    ):
        p_, g_ = make(shape, k)
        out = jax.block_until_ready(kernel_dice_loss(p_, g_, max_block_elems=blk))
        ref_ = _reference_dice_loss(p_, g_)
        assert jnp.allclose(out, ref_, rtol=1e-4, atol=1e-4), (shape, out, ref_)

    print("KERNEL_OK")
</pallas_src>

<mosaic_0001>
module attributes {stable_mosaic.version = 11 : i64} {
  func.func @_dice_partial_kernel(%arg0: i32, %arg1: i32, %arg2: memref<2x8x128xf32, #tpu.memory_space<vmem>>, %arg3: memref<2x8x128xf32, #tpu.memory_space<vmem>>, %arg4: memref<1x2x128xf32, #tpu.memory_space<vmem>>, %arg5: memref<1x2x128xf32, #tpu.memory_space<vmem>>, %arg6: memref<1x2x128xf32, #tpu.memory_space<vmem>>) attributes {dimension_semantics = [#tpu.dimension_semantics<arbitrary>, #tpu.dimension_semantics<arbitrary>], iteration_bounds = array<i64: 1, 1>, scalar_prefetch = 0 : i64, scratch_operands = 0 : i64, tpu.core_type = #tpu.core_type<tc>, window_params = [{transform_indices = @transform_0, window_bounds = array<i64: 2, 8, 128>}, {transform_indices = @transform_1, window_bounds = array<i64: 2, 8, 128>}, {transform_indices = @transform_2, window_bounds = array<i64: 1, 2, 128>}, {transform_indices = @transform_3, window_bounds = array<i64: 1, 2, 128>}, {transform_indices = @transform_4, window_bounds = array<i64: 1, 2, 128>}]} {
    %c0_i32 = arith.constant 0 : i32
    %0 = arith.cmpi eq, %arg1, %c0_i32 : i32
    %1 = arith.extui %0 : i1 to i32
    %c0_i32_0 = arith.constant 0 : i32
    %2 = arith.cmpi ne, %1, %c0_i32_0 : i32
    scf.if %2 {
      %cst_29 = arith.constant 0.000000e+00 : f32
      %36 = vector.broadcast %cst_29 : f32 to vector<1x2x128xf32>
      %c0_30 = arith.constant 0 : index
      %c0_31 = arith.constant 0 : index
      %c0_32 = arith.constant 0 : index
      %37 = vector.load %arg4[%c0_30, %c0_31, %c0_32] : memref<1x2x128xf32, #tpu.memory_space<vmem>>, vector<1x2x128xf32>
      tpu.vector_store %arg4[%c0_30, %c0_31, %c0_32], %36 {strides = array<i32>} : memref<1x2x128xf32, #tpu.memory_space<vmem>>, vector<1x2x128xf32>,
      %cst_33 = arith.constant 0.000000e+00 : f32
      %38 = vector.broadcast %cst_33 : f32 to vector<1x2x128xf32>
      %c0_34 = arith.constant 0 : index
      %c0_35 = arith.constant 0 : index
      %c0_36 = arith.constant 0 : index
      %39 = vector.load %arg5[%c0_34, %c0_35, %c0_36] : memref<1x2x128xf32, #tpu.memory_space<vmem>>, vector<1x2x128xf32>
      tpu.vector_store %arg5[%c0_34, %c0_35, %c0_36], %38 {strides = array<i32>} : memref<1x2x128xf32, #tpu.memory_space<vmem>>, vector<1x2x128xf32>,
      %cst_37 = arith.constant 0.000000e+00 : f32
      %40 = vector.broadcast %cst_37 : f32 to vector<1x2x128xf32>
      %c0_38 = arith.constant 0 : index
      %c0_39 = arith.constant 0 : index
      %c0_40 = arith.constant 0 : index
      %41 = vector.load %arg6[%c0_38, %c0_39, %c0_40] : memref<1x2x128xf32, #tpu.memory_space<vmem>>, vector<1x2x128xf32>
      tpu.vector_store %arg6[%c0_38, %c0_39, %c0_40], %40 {strides = array<i32>} : memref<1x2x128xf32, #tpu.memory_space<vmem>>, vector<1x2x128xf32>,
    } else {
    }
    %c0 = arith.constant 0 : index
    %c0_1 = arith.constant 0 : index
    %c0_2 = arith.constant 0 : index
    %3 = vector.load %arg2[%c0, %c0_1, %c0_2] : memref<2x8x128xf32, #tpu.memory_space<vmem>>, vector<2x8x128xf32>
    %cst = arith.constant 5.000000e-01 : f32
    %4 = vector.broadcast %cst : f32 to vector<2x8x128xf32>
    %5 = arith.mulf %4, %3 : vector<2x8x128xf32>
    %6 = math.tanh %5 : vector<2x8x128xf32>
    %cst_3 = arith.constant 5.000000e-01 : f32
    %7 = vector.broadcast %cst_3 : f32 to vector<2x8x128xf32>
    %8 = arith.mulf %7, %6 : vector<2x8x128xf32>
    %cst_4 = arith.constant 5.000000e-01 : f32
    %9 = vector.broadcast %cst_4 : f32 to vector<2x8x128xf32>
    %10 = arith.addf %8, %9 : vector<2x8x128xf32>
    %c0_5 = arith.constant 0 : index
    %c0_6 = arith.constant 0 : index
    %c0_7 = arith.constant 0 : index
    %11 = vector.load %arg3[%c0_5, %c0_6, %c0_7] : memref<2x8x128xf32, #tpu.memory_space<vmem>>, vector<2x8x128xf32>
    %c0_8 = arith.constant 0 : index
    %c0_9 = arith.constant 0 : index
    %c0_10 = arith.constant 0 : index
    %12 = vector.load %arg4[%c0_8, %c0_9, %c0_10] : memref<1x2x128xf32, #tpu.memory_space<vmem>>, vector<1x2x128xf32>
    %13 = vector.shape_cast %12 : vector<1x2x128xf32> to vector<2x128xf32>
    %14 = arith.mulf %10, %11 : vector<2x8x128xf32>
    %cst_11 = arith.constant dense<0.000000e+00> : vector<2x128xf32>
    %15 = vector.multi_reduction <add>, %14, %cst_11 [1] : vector<2x8x128xf32> to vector<2x128xf32>
    %16 = arith.addf %13, %15 : vector<2x128xf32>
    %c0_12 = arith.constant 0 : index
    %c0_13 = arith.constant 0 : index
    %c0_14 = arith.constant 0 : index
    %17 = vector.load %arg4[%c0_12, %c0_13, %c0_14] : memref<1x2x128xf32, #tpu.memory_space<vmem>>, vector<1x2x128xf32>
    %18 = vector.shape_cast %17 : vector<1x2x128xf32> to vector<2x128xf32>
    %19 = vector.shape_cast %16 : vector<2x128xf32> to vector<1x2x128xf32>
    tpu.vector_store %arg4[%c0_12, %c0_13, %c0_14], %19 {strides = array<i32>} : memref<1x2x128xf32, #tpu.memory_space<vmem>>, vector<1x2x128xf32>,
    %c0_15 = arith.constant 0 : index
    %c0_16 = arith.constant 0 : index
    %c0_17 = arith.constant 0 : index
    %20 = vector.load %arg5[%c0_15, %c0_16, %c0_17] : memref<1x2x128xf32, #tpu.memory_space<vmem>>, vector<1x2x128xf32>
    %21 = vector.shape_cast %20 : vector<1x2x128xf32> to vector<2x128xf32>
    %22 = arith.mulf %10, %10 : vector<2x8x128xf32>
    %cst_18 = arith.constant dense<0.000000e+00> : vector<2x128xf32>
    %23 = vector.multi_reduction <add>, %22, %cst_18 [1] : vector<2x8x128xf32> to vector<2x128xf32>
    %24 = arith.addf %21, %23 : vector<2x128xf32>
    %c0_19 = arith.constant 0 : index
    %c0_20 = arith.constant 0 : index
    %c0_21 = arith.constant 0 : index
    %25 = vector.load %arg5[%c0_19, %c0_20, %c0_21] : memref<1x2x128xf32, #tpu.memory_space<vmem>>, vector<1x2x128xf32>
    %26 = vector.shape_cast %25 : vector<1x2x128xf32> to vector<2x128xf32>
    %27 = vector.shape_cast %24 : vector<2x128xf32> to vector<1x2x128xf32>
    tpu.vector_store %arg5[%c0_19, %c0_20, %c0_21], %27 {strides = array<i32>} : memref<1x2x128xf32, #tpu.memory_space<vmem>>, vector<1x2x128xf32>,
    %c0_22 = arith.constant 0 : index
    %c0_23 = arith.constant 0 : index
    %c0_24 = arith.constant 0 : index
    %28 = vector.load %arg6[%c0_22, %c0_23, %c0_24] : memref<1x2x128xf32, #tpu.memory_space<vmem>>, vector<1x2x128xf32>
    %29 = vector.shape_cast %28 : vector<1x2x128xf32> to vector<2x128xf32>
    %30 = arith.mulf %11, %11 : vector<2x8x128xf32>
    %cst_25 = arith.constant dense<0.000000e+00> : vector<2x128xf32>
    %31 = vector.multi_reduction <add>, %30, %cst_25 [1] : vector<2x8x128xf32> to vector<2x128xf32>
    %32 = arith.addf %29, %31 : vector<2x128xf32>
    %c0_26 = arith.constant 0 : index
    %c0_27 = arith.constant 0 : index
    %c0_28 = arith.constant 0 : index
    %33 = vector.load %arg6[%c0_26, %c0_27, %c0_28] : memref<1x2x128xf32, #tpu.memory_space<vmem>>, vector<1x2x128xf32>
    %34 = vector.shape_cast %33 : vector<1x2x128xf32> to vector<2x128xf32>
    %35 = vector.shape_cast %32 : vector<2x128xf32> to vector<1x2x128xf32>
    tpu.vector_store %arg6[%c0_26, %c0_27, %c0_28], %35 {strides = array<i32>} : memref<1x2x128xf32, #tpu.memory_space<vmem>>, vector<1x2x128xf32>,
    return
  }
  func.func @transform_0(%arg0: i32, %arg1: i32) -> (i32, i32, i32) {
    %c1_i32 = arith.constant 1 : i32
    %0 = arith.muli %arg0, %c1_i32 : i32
    %1 = arith.addi %0, %arg1 : i32
    %c0_i32 = arith.constant 0 : i32
    %c0_i32_0 = arith.constant 0 : i32
    %c0_i32_1 = arith.constant 0 : i32
    return %c0_i32, %1, %c0_i32_0 : i32, i32, i32
  }
  func.func @transform_1(%arg0: i32, %arg1: i32) -> (i32, i32, i32) {
    %c1_i32 = arith.constant 1 : i32
    %0 = arith.muli %arg0, %c1_i32 : i32
    %1 = arith.addi %0, %arg1 : i32
    %c0_i32 = arith.constant 0 : i32
    %c0_i32_0 = arith.constant 0 : i32
    %c0_i32_1 = arith.constant 0 : i32
    return %c0_i32, %1, %c0_i32_0 : i32, i32, i32
  }
  func.func @transform_2(%arg0: i32, %arg1: i32) -> (i32, i32, i32) {
    %c0_i32 = arith.constant 0 : i32
    %c0_i32_0 = arith.constant 0 : i32
    %c0_i32_1 = arith.constant 0 : i32
    return %arg0, %c0_i32, %c0_i32_0 : i32, i32, i32
  }
  func.func @transform_3(%arg0: i32, %arg1: i32) -> (i32, i32, i32) {
    %c0_i32 = arith.constant 0 : i32
    %c0_i32_0 = arith.constant 0 : i32
    %c0_i32_1 = arith.constant 0 : i32
    return %arg0, %c0_i32, %c0_i32_0 : i32, i32, i32
  }
  func.func @transform_4(%arg0: i32, %arg1: i32) -> (i32, i32, i32) {
    %c0_i32 = arith.constant 0 : i32
    %c0_i32_0 = arith.constant 0 : i32
    %c0_i32_1 = arith.constant 0 : i32
    return %arg0, %c0_i32, %c0_i32_0 : i32, i32, i32
  }
}

</mosaic_0001>

<bundles_post_ra>
// kernel: tpu_custom_call.1
= control target key start
LH: loop header
LB: loop body
LE: loop exit
PB: predicated region body
PF: predicated region fallthrough
CT: control target
= control target key end

     0   :  { %10 = vsyncpa [#allocation3], 0  ;;  %s418_s0 = inlined_call_operand.hbm [shape: f32[2,8,128], index: 0, kind: input, shape index: {}]   ;;  %s419_s1 = inlined_call_operand.hbm [shape: f32[2,8,128], index: 1, kind: input, shape index: {}]   ;;  %s420_s2 = inlined_call_operand.hbm [shape: f32[1,2,128], index: 2, kind: output, shape index: {0}]   ;;  %s421_s3 = inlined_call_operand.hbm [shape: f32[1,2,128], index: 3, kind: output, shape index: {1}]   ;;  %s422_s4 = inlined_call_operand.hbm [shape: f32[1,2,128], index: 4, kind: output, shape index: {2}]  }
   0x1   :  { %11 = vsyncpa [#allocation6], 0 }
   0x2   :  { %12 = vsyncpa [#allocation4], 0 }
   0x3   :  { %13 = vsyncpa [#allocation9], 0  ;;  %s308_s15 = smov [#allocation2]   ;;  %s190_s19 = scalar_lea.hbm %s418_s0, 256 }
   0x4   :  { %s22_s16 = sshll.u32 %s308_s15, 4  ;;  %p191_p0 = scmp.ne.s32.totalorder %s418_s0, %s190_s19  ;;  %s23_s16 = int_to_ptr.vmem [resolvable:$true] %s22_s16 }
   0x5   :  { %p194_p1 = scmp.lt.u32.totalorder %s190_s19, %s418_s0 }
   0x7   :  { %p196_p2 = pnand %p194_p1, %p191_p0 }
   0x9   :  { %199 = shalt.err (!%p196_p2)
}
   0xa   :  { %s200_s24 = scalar_lea.vmem %s23_s16, 256  ;;  %p205_p4 = scmp.lt.s32.totalorder %s23_s16, %s23_s16 }
   0xb   :  { %p201_p3 = scmp.ne.s32.totalorder %s23_s16, %s200_s24  ;;  %p206_p5 = scmp.lt.s32.totalorder %s200_s24, %s200_s24 }
   0xd   :  { %p207_p6 = por %p206_p5, %p205_p4 }
   0xf   :  { %p208_p7 = pnand %p207_p6, %p201_p3 }
  0x11   :  { %211 = shalt.err (!%p208_p7)
}
  0x12   :  { %s309_s25 = smov 128   ;;  %s310_s26 = smov 8  }
  0x13   :  { %28 = dma.hbm_to_vmem [thread:$0]  %s418_s0, 256, %s23_s16, [#allocation3], %s309_s25, %s309_s25, %s310_s26  }
  0x14   :  { %s311_s29 = smov [#allocation5]   ;;  %s212_s7 = scalar_lea.hbm %s419_s1, 256 }
  0x15   :  { %s37_s30 = sshll.u32 %s311_s29, 4  ;;  %p213_p8 = scmp.ne.s32.totalorder %s419_s1, %s212_s7  ;;  %s38_s30 = int_to_ptr.vmem [resolvable:$true] %s37_s30 }
  0x16   :  { %p216_p9 = scmp.lt.u32.totalorder %s212_s7, %s419_s1 }
  0x18   :  { %p218_p10 = pnand %p216_p9, %p213_p8 }
  0x1a   :  { %221 = shalt.err (!%p218_p10)
}
  0x1b   :  { %s222_s12 = scalar_lea.vmem %s38_s30, 256  ;;  %p227_p12 = scmp.lt.s32.totalorder %s38_s30, %s38_s30 }
  0x1c   :  { %p223_p11 = scmp.ne.s32.totalorder %s38_s30, %s222_s12  ;;  %p228_p13 = scmp.lt.s32.totalorder %s222_s12, %s222_s12 }
  0x1e   :  { %p229_p0 = por %p228_p13, %p227_p12 }
  0x20   :  { %p230_p1 = pnand %p229_p0, %p223_p11 }
  0x22   :  { %233 = shalt.err (!%p230_p1)
}
  0x23   :  { %43 = dma.hbm_to_vmem [thread:$0]  %s419_s1, 256, %s38_s30, [#allocation6], %s309_s25, %s309_s25, %s310_s26  }
  0x24   :  { %300 = dma.done.wait [#allocation3], 256  }
  0x25   :  { %301 = vsyncadd [#allocation3], 4294967040 }
  0x26   :  { %302 = dma.done.wait [#allocation6], 256  }
  0x27   :  { %303 = vsyncadd [#allocation6], 4294967040  ;;  %v312_v0 = vmov 0.0   ;;  %v59_v1 = vld [vmem:[#allocation2] sm:$0xff]  ;;  %v60_v2 = vld [vmem:[#allocation2 + $0x8] sm:$0xff]  ;;  %vm88_vm0 = vcmask 1041409  }
  0x28   :  { %57 = vst [vmem:[#allocation8] sm:$0x3] %v312_v0  ;;  %56 = vst [vmem:[#allocation7] sm:$0x3] %v312_v0  ;;  %v69_v3 = vld [vmem:[#allocation5] sm:$0xff]  ;;  %v61_v4 = vmul.f32 0.5, %v59_v1 }
  0x29   :  { %58 = vst [vmem:[#allocation10] sm:$0x3] %v312_v0  ;;  %v62_v5 = vmul.f32 0.5, %v60_v2  ;;  %v70_v6 = vld [vmem:[#allocation5 + $0x8] sm:$0xff]  ;;  %v115_v7 = vmul.f32 %v69_v3, %v69_v3  ;;  %s313_s1 = smov [#allocation8]   ;;  %s314_s15 = smov [#allocation7]  }
  0x2a   :  { %v116_v8 = vmul.f32 %v70_v6, %v70_v6  ;;  %186 = vtanh.f32 %v61_v4  ;;  %s151_s14 = sshll.u32 %s313_s1, 4  ;;  %s141_s16 = sshll.u32 %s314_s15, 4  ;;  %s152_s14 = int_to_ptr.vmem [resolvable:$true] %s151_s14  ;;  %s368_s16 = int_to_ptr.vmem [resolvable:$true] %s141_s16 }
  0x2b   :  { %v117_v9 = vrot.slane %v115_v7, 4  ;;  %188 = vtanh.f32 %v62_v5  ;;  %s315_s17 = smov [#allocation10]   ;;  %s234_s19 = scalar_lea.vmem %s152_s14, 32 }
  0x2c   :  { %v123_v10 = vrot.slane %v116_v8, 4  ;;  %s161_s18 = sshll.u32 %s315_s17, 4  ;;  %p235_p2 = scmp.ne.s32.totalorder %s152_s14, %s234_s19  ;;  %s370_s18 = int_to_ptr.vmem [resolvable:$true] %s161_s18 }
  0x2d   :  { %v118_v11 = vadd.f32 %v117_v9, %v115_v7  ;;  %p239_p3 = scmp.lt.s32.totalorder %s152_s14, %s152_s14  ;;  %p240_p4 = scmp.lt.s32.totalorder %s234_s19, %s234_s19 }
  0x2e   :  { %v124_v12 = vadd.f32 %v123_v10, %v116_v8 }
  0x2f   :  { %v119_v13 = vrot.slane %v118_v11, 2  ;;  %v93_v56 = vld [vmem:[#allocation8] sm:$0x3]  ;;  %v71_v58 = vld [vmem:[#allocation7] sm:$0x3]  ;;  %p241_p5 = por %p240_p4, %p239_p3 }
  0x30   :  { %v125_v14 = vrot.slane %v124_v12, 2  ;;  %v114_v23 = vld [vmem:[#allocation10] sm:$0x3] }
  0x31   :  { %v120_v15 = vadd.f32 %v119_v13, %v118_v11  ;;  %p242_p6 = pnand %p241_p5, %p235_p2 }
  0x32   :  { %v126_v16 = vadd.f32 %v125_v14, %v124_v12 }
  0x33   :  { %v121_v17 = vrot.slane %v120_v15, 1 }
  0x34   :  { %v127_v18 = vrot.slane %v126_v16, 1  ;;  %v187_v19 = vpop.eup %186 }
  0x35   :  { %v122_v20 = vadd.f32 %v121_v17, %v120_v15  ;;  %v189_v21 = vpop.eup %188  ;;  %v65_v22 = vmul.f32 0.5, %v187_v19 }
  0x36   :  { %v128_v24 = vadd.f32 %v127_v18, %v126_v16  ;;  %v66_v25 = vmul.f32 0.5, %v189_v21 }
  0x37   :  { %v67_v26 = vadd.f32 0.5, %v65_v22 }
  0x38   :  { %v131_v27 = vsel %vm88_vm0, %v128_v24, %v122_v20  ;;  %v68_v28 = vadd.f32 0.5, %v66_v25 }
  0x39   :  { %v133_v29 = vadd.f32 %v131_v27, %v114_v23  ;;  %v94_v30 = vmul.f32 %v67_v26, %v67_v26  ;;  %v72_v31 = vmul.f32 %v69_v3, %v67_v26 }
  0x3a   :  { %v95_v32 = vmul.f32 %v68_v28, %v68_v28  ;;  %v73_v33 = vmul.f32 %v70_v6, %v68_v28 }
  0x3b   :  { %134 = vst [vmem:[#allocation10] sm:$0x3] %v133_v29  ;;  %v96_v34 = vrot.slane %v94_v30, 4  ;;  %v74_v35 = vrot.slane %v72_v31, 4 }
  0x3c   :  { %v102_v36 = vrot.slane %v95_v32, 4  ;;  %v80_v37 = vrot.slane %v73_v33, 4 }
  0x3d   :  { %v97_v38 = vadd.f32 %v96_v34, %v94_v30  ;;  %v75_v39 = vadd.f32 %v74_v35, %v72_v31 }
  0x3e   :  { %v103_v40 = vadd.f32 %v102_v36, %v95_v32  ;;  %v81_v41 = vadd.f32 %v80_v37, %v73_v33 }
  0x3f   :  { %v98_v42 = vrot.slane %v97_v38, 2  ;;  %v76_v43 = vrot.slane %v75_v39, 2 }
  0x40   :  { %v104_v44 = vrot.slane %v103_v40, 2  ;;  %v82_v45 = vrot.slane %v81_v41, 2 }
  0x41   :  { %v99_v46 = vadd.f32 %v98_v42, %v97_v38  ;;  %v77_v47 = vadd.f32 %v76_v43, %v75_v39 }
  0x42   :  { %v105_v48 = vadd.f32 %v104_v44, %v103_v40  ;;  %v83_v49 = vadd.f32 %v82_v45, %v81_v41 }
  0x43   :  { %v100_v50 = vrot.slane %v99_v46, 1  ;;  %v78_v51 = vrot.slane %v77_v47, 1 }
  0x44   :  { %v106_v52 = vrot.slane %v105_v48, 1  ;;  %v84_v53 = vrot.slane %v83_v49, 1 }
  0x45   :  { %v101_v54 = vadd.f32 %v100_v50, %v99_v46  ;;  %v79_v55 = vadd.f32 %v78_v51, %v77_v47 }
  0x46   :  { %v107_v57 = vadd.f32 %v106_v52, %v105_v48  ;;  %v85_v59 = vadd.f32 %v84_v53, %v83_v49 }
  0x48   :  { %v110_v60 = vsel %vm88_vm0, %v107_v57, %v101_v54  ;;  %v89_v61 = vsel %vm88_vm0, %v85_v59, %v79_v55 }
  0x49   :  { %v112_v62 = vadd.f32 %v110_v60, %v93_v56  ;;  %v91_v63 = vadd.f32 %v89_v61, %v71_v58 }
  0x4b   :  { %113 = vst [vmem:[#allocation8] sm:$0x3] %v112_v62  ;;  %92 = vst [vmem:[#allocation7] sm:$0x3] %v91_v63 }
  0x4c   :  { %245 = shalt.err (!%p242_p6)
}
  0x4d   :  { %s246_s22 = scalar_lea.hbm %s421_s3, 32 }
  0x4e   :  { %p247_p7 = scmp.ne.s32.totalorder %s421_s3, %s246_s22  ;;  %p250_p8 = scmp.lt.u32.totalorder %s246_s22, %s421_s3 }
  0x50   :  { %p252_p9 = pnand %p250_p8, %p247_p7 }
  0x52   :  { %255 = shalt.err (!%p252_p9)
}
  0x53   :  { %154 = dma.vmem_to_hbm [thread:$0]  %s152_s14, 32, %s421_s3, [#allocation9]  }
  0x54   :  { %s256_s29 = scalar_lea.vmem %s368_s16, 32  ;;  %p261_p11 = scmp.lt.s32.totalorder %s368_s16, %s368_s16 }
  0x55   :  { %p257_p10 = scmp.ne.s32.totalorder %s368_s16, %s256_s29  ;;  %p262_p12 = scmp.lt.s32.totalorder %s256_s29, %s256_s29 }
  0x57   :  { %p263_p13 = por %p262_p12, %p261_p11 }
  0x59   :  { %p264_p0 = pnand %p263_p13, %p257_p10 }
  0x5b   :  { %267 = shalt.err (!%p264_p0)
}
  0x5c   :  { %s268_s6 = scalar_lea.hbm %s420_s2, 32 }
  0x5d   :  { %p269_p1 = scmp.ne.s32.totalorder %s420_s2, %s268_s6  ;;  %p272_p2 = scmp.lt.u32.totalorder %s268_s6, %s420_s2 }
  0x5f   :  { %p274_p3 = pnand %p272_p2, %p269_p1 }
  0x61   :  { %277 = shalt.err (!%p274_p3)
}
  0x62   :  { %144 = dma.vmem_to_hbm [thread:$0]  %s368_s16, 32, %s420_s2, [#allocation4]  }
  0x63   :  { %s278_s12 = scalar_lea.vmem %s370_s18, 32  ;;  %p283_p5 = scmp.lt.s32.totalorder %s370_s18, %s370_s18 }
  0x64   :  { %p279_p4 = scmp.ne.s32.totalorder %s370_s18, %s278_s12  ;;  %p284_p6 = scmp.lt.s32.totalorder %s278_s12, %s278_s12 }
  0x66   :  { %p285_p7 = por %p284_p6, %p283_p5 }
  0x68   :  { %p286_p8 = pnand %p285_p7, %p279_p4 }
  0x6a   :  { %289 = shalt.err (!%p286_p8)
}
  0x6b   :  { %s290_s1 = scalar_lea.hbm %s422_s4, 32 }
  0x6c   :  { %p291_p9 = scmp.ne.s32.totalorder %s422_s4, %s290_s1  ;;  %p294_p10 = scmp.lt.u32.totalorder %s290_s1, %s422_s4 }
  0x6e   :  { %p296_p11 = pnand %p294_p10, %p291_p9 }
  0x70   :  { %299 = shalt.err (!%p296_p11)
}
  0x71   :  { %164 = dma.vmem_to_hbm [thread:$0]  %s370_s18, 32, %s422_s4, [#allocation9]  }
  0x72   :  { %304 = dma.done.wait [#allocation4], 32  }
  0x73   :  { %305 = vsyncadd [#allocation4], 4294967264 }
  0x74   :  { %306 = dma.done.wait [#allocation9], 64  }
  0x75   :  { %307 = vsyncadd [#allocation9], 4294967232 }
  0x76   :  { %174 = vsyncpa [#allocation3], 1 }
  0x77   :  { %175 = vsyncpa [#allocation6], 1 }
  0x78   :  { %176 = vsyncpa [#allocation4], 1 }
  0x79   :  { %177 = vsyncpa [#allocation9], 1 }

</bundles_post_ra>
